<compile_context>
chip_gen: v7x
topology: tpu7x:2x2x1
jax: 0.10.0
libtpu: 0.0.40
codegen_flags: <defaults>
</compile_context>

<pallas_src>
import functools

import jax
import jax.numpy as jnp
import numpy as np
from jax import lax
from jax.experimental import pallas as pl
from jax.experimental.pallas import tpu as pltpu


def _nt_xent_kernel(row_ref, part_ref, col_ref, logprob_ref, l_scr,
                    *, inv_temp, tm, tn, two_n, padded):
    # row_ref : (TM, C) normalized rows for this row tile (mxu dtype)
    # part_ref: (TM, C) normalized rows shifted by +N (positive partners)
    # col_ref : (TN, C) normalized rows for this column tile
    # logprob_ref: (TM, 1) per-row log-prob output (written at last column step)
    # l_scr   : (TM, 1) running softmax denominator
    i = pl.program_id(0)          # row-tile index    ("parallel")
    j = pl.program_id(1)          # column-tile index ("arbitrary", innermost)

    @pl.when(j == 0)
    def _init():
        l_scr[...] = jnp.zeros_like(l_scr)

    # cosine tile on the MXU: contract the lane (C) dim of both operands
    # directly (no transpose); bf16 operands, f32 accumulation.
    s = lax.dot_general(row_ref[...], col_ref[...], (((1,), (1,)), ((), ())),
                        preferred_element_type=jnp.float32)       # (TM, TN)

    # Constant 1/T shift instead of an online running max: rows are unit-norm,
    # so the true row max (the diagonal the reference subtracts) is exactly
    # 1/T; exponents stay in (exp(-2/T), ~1].  log_prob is shift-invariant.
    p = jnp.exp((s - 1.0) * inv_temp)

    row0 = i * tm
    col0 = j * tn
    needs_mask = jnp.logical_and(row0 < col0 + tn, col0 < row0 + tm)
    if padded:
        # the last column tile contains the zero-padded columns
        needs_mask = jnp.logical_or(needs_mask, j == pl.num_programs(1) - 1)

    @pl.when(needs_mask)
    def _accumulate_masked():
        # Only O(2N/TN) tiles pay for the mask; one (tm,1) and one (1,tn) iota
        # with a broadcast compare (no full (tm,tn) int32 tensors).
        grow = row0 + lax.broadcasted_iota(jnp.int32, (tm, 1), 0)
        gcol = col0 + lax.broadcasted_iota(jnp.int32, (1, tn), 1)
        kill = grow == gcol                               # self-similarity
        if padded:
            kill = jnp.logical_or(kill, gcol >= two_n)    # padded columns
        l_scr[...] += jnp.sum(jnp.where(kill, 0.0, p), axis=1, keepdims=True)

    @pl.when(jnp.logical_not(needs_mask))
    def _accumulate_plain():
        l_scr[...] += jnp.sum(p, axis=1, keepdims=True)

    @pl.when(j == pl.num_programs(1) - 1)
    def _finalize():
        # positive logit: row r pairs with row (r + N) mod 2N — row-wise dot
        # with the (already normalized) partner tile; softmax math stays f32.
        fr = row_ref[...].astype(jnp.float32)
        fp = part_ref[...].astype(jnp.float32)
        pos = jnp.sum(fr * fp, axis=1, keepdims=True)     # (TM, 1) cosine
        logprob_ref[...] = (pos - 1.0) * inv_temp - jnp.log(l_scr[...])


def _pick_row_tile(n, cap=256):
    """Largest multiple of 8 that divides n, capped at `cap`."""
    best = 8
    t = 8
    while t <= min(n, cap):
        if n % t == 0:
            best = t
        t += 8
    return best


def nt_xent_dist(feat1, feat2, temperature=0.07, base_temperature=0.07,
                 tm=None, tn=None, mxu_dtype=jnp.bfloat16):
    """NT-Xent loss, single-device (world_size == 1) semantics of NT_Xent_dist."""
    n, c = feat1.shape
    assert feat2.shape == (n, c), "feat1/feat2 must have the same shape"
    if n % 8 != 0:
        raise ValueError("per-view batch size must be a multiple of 8 "
                         "(TPU sublane tiling of the row blocks)")
    two_n = 2 * n

    # world_size == 1 gather is the identity; concat the two views.
    features = jnp.concatenate(
        [feat1.astype(jnp.float32), feat2.astype(jnp.float32)], axis=0)  # (2N, C)

    # Normalize ONCE here (f32), matching torch F.normalize(dim=1) with eps=1e-12.
    norm = jnp.sqrt(jnp.sum(features * features, axis=1, keepdims=True))
    features = features / jnp.maximum(norm, 1e-12)

    # Lane-dense column tiles: multiples of 128 (256 preferred).  If 2N is not a
    # multiple, zero-pad; padded columns are masked out of the denominator and
    # padded rows are never used as query rows.
    if tn is None:
        tn = next((cand for cand in (256, 128) if two_n % cand == 0), 128)
    assert tn % 128 == 0, f"column tile tn={tn} must be a multiple of 128"
    two_n_pad = -(-two_n // tn) * tn
    if tm is None:
        tm = _pick_row_tile(n, 256)   # tm | N so the +N partner shift is whole blocks
    assert tm % 8 == 0 and n % tm == 0, f"bad row tile tm={tm}"

    if two_n_pad > two_n:
        features = jnp.pad(features, ((0, two_n_pad - two_n), (0, 0)))
    feats_mxu = features.astype(mxu_dtype)

    gr = two_n // tm                  # row tiles (real rows only)
    gc = two_n_pad // tn              # lane-dense column tiles
    shift = n // tm                   # +N shift measured in row blocks

    kernel = functools.partial(
        _nt_xent_kernel, inv_temp=1.0 / float(temperature), tm=tm, tn=tn,
        two_n=two_n, padded=two_n_pad > two_n)

    # VMEM budget: double-buffered row/partner/column streams + (tm, tn) tile work.
    itemsize = jnp.dtype(mxu_dtype).itemsize
    vmem_est = 2 * (2 * tm + tn) * c * itemsize + 8 * tm * tn * 4 + (2 << 20)
    vmem_limit = None
    if vmem_est > (30 << 20):
        vmem_limit = min(int(vmem_est * 3 // 2), 60 << 20)   # headroom; < v7x 64 MiB

    grid_spec = pltpu.PrefetchScalarGridSpec(
        num_scalar_prefetch=0,
        grid=(gr, gc),
        in_specs=[
            pl.BlockSpec((tm, c), lambda i, j: (i, 0)),                 # row tile
            pl.BlockSpec((tm, c), lambda i, j: ((i + shift) % gr, 0)),  # +N partner
            pl.BlockSpec((tn, c), lambda i, j: (j, 0)),                 # column tile
        ],
        out_specs=pl.BlockSpec((tm, 1), lambda i, j: (i, 0)),
        scratch_shapes=[pltpu.VMEM((tm, 1), jnp.float32)],   # running denominator
    )

    log_prob = pl.pallas_call(
        kernel,
        out_shape=jax.ShapeDtypeStruct((two_n, 1), jnp.float32),
        grid_spec=grid_spec,
        compiler_params=pltpu.CompilerParams(
            dimension_semantics=("parallel", "arbitrary"),
            vmem_limit_bytes=vmem_limit),
    )(feats_mxu, feats_mxu, feats_mxu)

    return -(float(temperature) / float(base_temperature)) * jnp.mean(log_prob)


def _reference_nt_xent(feat1, feat2, temperature=0.07, base_temperature=0.07):
    # pure-JAX reference mirroring the PyTorch forward (world_size = 1)
    n = feat1.shape[0]
    features = jnp.concatenate([feat1, feat2], axis=0).astype(jnp.float32)
    norm = jnp.linalg.norm(features, axis=1, keepdims=True)
    features = features / jnp.maximum(norm, 1e-12)
    logits = features @ features.T / temperature
    logits = logits - jnp.max(logits, axis=1, keepdims=True)
    two_n = 2 * n
    eye = jnp.eye(two_n, dtype=bool)
    exp_logits = jnp.where(eye, 0.0, jnp.exp(logits))
    denom = exp_logits.sum(axis=1)
    pos_idx = (jnp.arange(two_n) + n) % two_n
    pos_logit = logits[jnp.arange(two_n), pos_idx]
    log_prob = pos_logit - jnp.log(denom)
    return -(temperature / base_temperature) * jnp.mean(log_prob)


if __name__ == "__main__":
    key = jax.random.PRNGKey(0)
    k1, k2, k3, k4 = jax.random.split(key, 4)

    # Case 1: small shapes (B=16, C=128 -> 2N=32 < tn=128): exercises the
    # padded-column masking path (single column tile).
    B1, C1 = 16, 128
    f1 = jax.random.normal(k1, (B1, C1), dtype=jnp.float32)
    f2 = jax.random.normal(k2, (B1, C1), dtype=jnp.float32)
    ref1 = _reference_nt_xent(f1, f2)

    out1 = jax.block_until_ready(nt_xent_dist(f1, f2))                       # bf16 MXU
    np.testing.assert_allclose(np.asarray(out1), np.asarray(ref1),
                               rtol=3e-2, atol=3e-2)
    out1_f32 = jax.block_until_ready(nt_xent_dist(f1, f2, mxu_dtype=jnp.float32))
    np.testing.assert_allclose(np.asarray(out1_f32), np.asarray(ref1),
                               rtol=5e-4, atol=1e-4)

    # Case 2: B=192, C=128 -> 2N=384, tn=128 (3 column tiles, no padding):
    # exercises the multi-tile accumulation, diagonal-straddling and plain paths.
    B2, C2 = 192, 128
    g1 = jax.random.normal(k3, (B2, C2), dtype=jnp.float32)
    g2 = jax.random.normal(k4, (B2, C2), dtype=jnp.float32)
    ref2 = _reference_nt_xent(g1, g2)

    out2 = jax.block_until_ready(nt_xent_dist(g1, g2))                       # bf16 MXU
    np.testing.assert_allclose(np.asarray(out2), np.asarray(ref2),
                               rtol=3e-2, atol=3e-2)
    out2_f32 = jax.block_until_ready(nt_xent_dist(g1, g2, mxu_dtype=jnp.float32))
    np.testing.assert_allclose(np.asarray(out2_f32), np.asarray(ref2),
                               rtol=5e-4, atol=1e-4)

    print("KERNEL_OK")
</pallas_src>

<mosaic_0001>
module attributes {stable_mosaic.version = 11 : i64} {
  func.func @_nt_xent_kernel(%arg0: i32, %arg1: i32, %arg2: memref<16x128xbf16, #tpu.memory_space<vmem>>, %arg3: memref<16x128xbf16, #tpu.memory_space<vmem>>, %arg4: memref<128x128xbf16, #tpu.memory_space<vmem>>, %arg5: memref<16x1xf32, #tpu.memory_space<vmem>>, %arg6: memref<16x1xf32, #tpu.memory_space<vmem>>) attributes {dimension_semantics = [#tpu.dimension_semantics<parallel>, #tpu.dimension_semantics<arbitrary>], iteration_bounds = array<i64: 2, 1>, scalar_prefetch = 0 : i64, scratch_operands = 1 : i64, tpu.core_type = #tpu.core_type<tc>, window_params = [{transform_indices = @transform_0, window_bounds = array<i64: 16, 128>}, {transform_indices = @transform_1, window_bounds = array<i64: 16, 128>}, {transform_indices = @transform_2, window_bounds = array<i64: 128, 128>}, {transform_indices = @transform_3, window_bounds = array<i64: 16, 1>}]} {
    %c0_i32 = arith.constant 0 : i32
    %0 = arith.cmpi eq, %arg1, %c0_i32 : i32
    %1 = arith.extui %0 : i1 to i32
    %c0_i32_0 = arith.constant 0 : i32
    %2 = arith.cmpi ne, %1, %c0_i32_0 : i32
    scf.if %2 {
      %cst_13 = arith.constant 0.000000e+00 : f32
      %28 = vector.broadcast %cst_13 : f32 to vector<16x1xf32>
      %c0_14 = arith.constant 0 : index
      %c0_15 = arith.constant 0 : index
      %29 = vector.load %arg6[%c0_14, %c0_15] : memref<16x1xf32, #tpu.memory_space<vmem>>, vector<16x1xf32>
      tpu.vector_store %arg6[%c0_14, %c0_15], %28 {strides = array<i32>} : memref<16x1xf32, #tpu.memory_space<vmem>>, vector<16x1xf32>,
    } else {
    }
    %c0 = arith.constant 0 : index
    %c0_1 = arith.constant 0 : index
    %3 = vector.load %arg2[%c0, %c0_1] : memref<16x128xbf16, #tpu.memory_space<vmem>>, vector<16x128xbf16>
    %c0_2 = arith.constant 0 : index
    %c0_3 = arith.constant 0 : index
    %4 = vector.load %arg4[%c0_2, %c0_3] : memref<128x128xbf16, #tpu.memory_space<vmem>>, vector<128x128xbf16>
    %cst = arith.constant dense<0.000000e+00> : vector<16x128xf32>
    %5 = tpu.matmul %3, %4, %cst {dimension_numbers = #tpu.dot_dimension_numbers<[1], [1], [0], [0], [0, 0, 1, 0], [], []>} : vector<16x128xbf16>, vector<128x128xbf16>, vector<16x128xf32> -> vector<16x128xf32>
    %cst_4 = arith.constant 1.000000e+00 : f32
    %6 = vector.broadcast %cst_4 : f32 to vector<16x128xf32>
    %7 = arith.subf %5, %6 : vector<16x128xf32>
    %cst_5 = arith.constant 14.2857141 : f32
    %8 = vector.broadcast %cst_5 : f32 to vector<16x128xf32>
    %9 = arith.mulf %7, %8 : vector<16x128xf32>
    %10 = math.exp %9 : vector<16x128xf32>
    %c16_i32 = arith.constant 16 : i32
    %11 = arith.muli %arg0, %c16_i32 : i32
    %c128_i32 = arith.constant 128 : i32
    %12 = arith.muli %arg1, %c128_i32 : i32
    %c128_i32_6 = arith.constant 128 : i32
    %13 = arith.addi %12, %c128_i32_6 : i32
    %14 = arith.cmpi slt, %11, %13 : i32
    %c16_i32_7 = arith.constant 16 : i32
    %15 = arith.addi %11, %c16_i32_7 : i32
    %16 = arith.cmpi slt, %12, %15 : i32
    %17 = arith.andi %14, %16 : i1
    %c0_i32_8 = arith.constant 0 : i32
    %18 = arith.cmpi eq, %arg1, %c0_i32_8 : i32
    %19 = arith.ori %17, %18 : i1
    %20 = arith.extui %19 : i1 to i32
    %c0_i32_9 = arith.constant 0 : i32
    %21 = arith.cmpi ne, %20, %c0_i32_9 : i32
    scf.if %21 {
      %28 = tpu.iota {dimensions = array<i32: 0>} : vector<16x1xi32>
      %29 = vector.broadcast %11 : i32 to vector<16x1xi32>
      %30 = arith.addi %29, %28 : vector<16x1xi32>
      %31 = tpu.iota {dimensions = array<i32: 1>} : vector<1x128xi32>
      %32 = vector.broadcast %12 : i32 to vector<1x128xi32>
      %33 = arith.addi %32, %31 : vector<1x128xi32>
      %34 = vector.broadcast %30 : vector<16x1xi32> to vector<16x128xi32>
      %35 = vector.broadcast %33 : vector<1x128xi32> to vector<16x128xi32>
      %36 = arith.cmpi eq, %34, %35 : vector<16x128xi32>
      %c32_i32 = arith.constant 32 : i32
      %37 = vector.broadcast %c32_i32 : i32 to vector<1x128xi32>
      %38 = arith.cmpi sge, %33, %37 : vector<1x128xi32>
      %39 = vector.broadcast %38 : vector<1x128xi1> to vector<16x128xi1>
      %40 = arith.ori %36, %39 : vector<16x128xi1>
      %c0_13 = arith.constant 0 : index
      %c0_14 = arith.constant 0 : index
      %41 = vector.load %arg6[%c0_13, %c0_14] : memref<16x1xf32, #tpu.memory_space<vmem>>, vector<16x1xf32>
      %cst_15 = arith.constant 0.000000e+00 : f32
      %42 = vector.broadcast %cst_15 : f32 to vector<16x128xf32>
      %43 = arith.select %40, %42, %10 : vector<16x128xi1>, vector<16x128xf32>
      %cst_16 = arith.constant dense<0.000000e+00> : vector<16xf32>
      %44 = vector.multi_reduction <add>, %43, %cst_16 [1] : vector<16x128xf32> to vector<16xf32>
      %45 = vector.shape_cast %44 : vector<16xf32> to vector<16x1xf32>
      %46 = arith.addf %41, %45 : vector<16x1xf32>
      %c0_17 = arith.constant 0 : index
      %c0_18 = arith.constant 0 : index
      %47 = vector.load %arg6[%c0_17, %c0_18] : memref<16x1xf32, #tpu.memory_space<vmem>>, vector<16x1xf32>
      tpu.vector_store %arg6[%c0_17, %c0_18], %46 {strides = array<i32>} : memref<16x1xf32, #tpu.memory_space<vmem>>, vector<16x1xf32>,
    } else {
    }
    %true = arith.constant true
    %22 = arith.xori %19, %true : i1
    %23 = arith.extui %22 : i1 to i32
    %c0_i32_10 = arith.constant 0 : i32
    %24 = arith.cmpi ne, %23, %c0_i32_10 : i32
    scf.if %24 {
      %c0_13 = arith.constant 0 : index
      %c0_14 = arith.constant 0 : index
      %28 = vector.load %arg6[%c0_13, %c0_14] : memref<16x1xf32, #tpu.memory_space<vmem>>, vector<16x1xf32>
      %cst_15 = arith.constant dense<0.000000e+00> : vector<16xf32>
      %29 = vector.multi_reduction <add>, %10, %cst_15 [1] : vector<16x128xf32> to vector<16xf32>
      %30 = vector.shape_cast %29 : vector<16xf32> to vector<16x1xf32>
      %31 = arith.addf %28, %30 : vector<16x1xf32>
      %c0_16 = arith.constant 0 : index
      %c0_17 = arith.constant 0 : index
      %32 = vector.load %arg6[%c0_16, %c0_17] : memref<16x1xf32, #tpu.memory_space<vmem>>, vector<16x1xf32>
      tpu.vector_store %arg6[%c0_16, %c0_17], %31 {strides = array<i32>} : memref<16x1xf32, #tpu.memory_space<vmem>>, vector<16x1xf32>,
    } else {
    }
    %c0_i32_11 = arith.constant 0 : i32
    %25 = arith.cmpi eq, %arg1, %c0_i32_11 : i32
    %26 = arith.extui %25 : i1 to i32
    %c0_i32_12 = arith.constant 0 : i32
    %27 = arith.cmpi ne, %26, %c0_i32_12 : i32
    scf.if %27 {
      %c0_13 = arith.constant 0 : index
      %c0_14 = arith.constant 0 : index
      %28 = vector.load %arg2[%c0_13, %c0_14] : memref<16x128xbf16, #tpu.memory_space<vmem>>, vector<16x128xbf16>
      %29 = arith.extf %28 : vector<16x128xbf16> to vector<16x128xf32>
      %c0_15 = arith.constant 0 : index
      %c0_16 = arith.constant 0 : index
      %30 = vector.load %arg3[%c0_15, %c0_16] : memref<16x128xbf16, #tpu.memory_space<vmem>>, vector<16x128xbf16>
      %31 = arith.extf %30 : vector<16x128xbf16> to vector<16x128xf32>
      %32 = arith.mulf %29, %31 : vector<16x128xf32>
      %cst_17 = arith.constant dense<0.000000e+00> : vector<16xf32>
      %33 = vector.multi_reduction <add>, %32, %cst_17 [1] : vector<16x128xf32> to vector<16xf32>
      %34 = vector.shape_cast %33 : vector<16xf32> to vector<16x1xf32>
      %cst_18 = arith.constant 1.000000e+00 : f32
      %35 = vector.broadcast %cst_18 : f32 to vector<16x1xf32>
      %36 = arith.subf %34, %35 : vector<16x1xf32>
      %cst_19 = arith.constant 14.2857141 : f32
      %37 = vector.broadcast %cst_19 : f32 to vector<16x1xf32>
      %38 = arith.mulf %36, %37 : vector<16x1xf32>
      %c0_20 = arith.constant 0 : index
      %c0_21 = arith.constant 0 : index
      %39 = vector.load %arg6[%c0_20, %c0_21] : memref<16x1xf32, #tpu.memory_space<vmem>>, vector<16x1xf32>
      %40 = math.log %39 : vector<16x1xf32>
      %41 = arith.subf %38, %40 : vector<16x1xf32>
      %c0_22 = arith.constant 0 : index
      %c0_23 = arith.constant 0 : index
      %42 = vector.load %arg5[%c0_22, %c0_23] : memref<16x1xf32, #tpu.memory_space<vmem>>, vector<16x1xf32>
      tpu.vector_store %arg5[%c0_22, %c0_23], %41 {strides = array<i32>} : memref<16x1xf32, #tpu.memory_space<vmem>>, vector<16x1xf32>,
    } else {
    }
    return
  }
  func.func @transform_0(%arg0: i32, %arg1: i32) -> (i32, i32) {
    %c0_i32 = arith.constant 0 : i32
    %c0_i32_0 = arith.constant 0 : i32
    return %arg0, %c0_i32 : i32, i32
  }
  func.func @transform_1(%arg0: i32, %arg1: i32) -> (i32, i32) {
    %c1_i32 = arith.constant 1 : i32
    %0 = arith.addi %arg0, %c1_i32 : i32
    %c2_i32 = arith.constant 2 : i32
    %c0_i32 = arith.constant 0 : i32
    %1 = arith.cmpi eq, %c2_i32, %c0_i32 : i32
    %c1_i32_0 = arith.constant 1 : i32
    %2 = arith.select %1, %c1_i32_0, %c2_i32 : i32
    %3 = arith.remsi %0, %2 : i32
    %c0_i32_1 = arith.constant 0 : i32
    %4 = arith.cmpi ne, %3, %c0_i32_1 : i32
    %c0_i32_2 = arith.constant 0 : i32
    %5 = arith.cmpi slt, %3, %c0_i32_2 : i32
    %c0_i32_3 = arith.constant 0 : i32
    %6 = arith.cmpi slt, %2, %c0_i32_3 : i32
    %7 = arith.xori %5, %6 : i1
    %8 = arith.andi %7, %4 : i1
    %9 = arith.addi %3, %2 : i32
    %10 = arith.select %8, %9, %3 : i32
    %c0_i32_4 = arith.constant 0 : i32
    %c0_i32_5 = arith.constant 0 : i32
    return %10, %c0_i32_4 : i32, i32
  }
  func.func @transform_2(%arg0: i32, %arg1: i32) -> (i32, i32) {
    %c0_i32 = arith.constant 0 : i32
    %c0_i32_0 = arith.constant 0 : i32
    return %arg1, %c0_i32 : i32, i32
  }
  func.func @transform_3(%arg0: i32, %arg1: i32) -> (i32, i32) {
    %c0_i32 = arith.constant 0 : i32
    %c0_i32_0 = arith.constant 0 : i32
    return %arg0, %c0_i32 : i32, i32
  }
}

</mosaic_0001>

<bundles_post_ra>
// kernel: tpu_custom_call.1
= control target key start
LH: loop header
LB: loop body
LE: loop exit
PB: predicated region body
PF: predicated region fallthrough
CT: control target
= control target key end

     0   :  { %s1340_s0 = inlined_call_operand.hbm [shape: bf16[128,128], index: 0, kind: input, shape index: {}]   ;;  %s1341_s1 = inlined_call_operand.hbm [shape: bf16[128,128], index: 1, kind: input, shape index: {}]   ;;  %s1342_s2 = inlined_call_operand.hbm [shape: bf16[128,128], index: 2, kind: input, shape index: {}]   ;;  %s1343_s3 = inlined_call_operand.vmem [shape: f32[32,1], index: 3, kind: output, shape index: {}]  }
   0x1   :  { %1356 = sst [smem:[#allocation12_spill]] %s1342_s2 }
   0x2   :  { %1357 = sst [smem:[#allocation13_spill]] %s1343_s3 }
   0x3   :  { %8 = vsyncpa [#allocation4], 0 }
   0x4   :  { %10 = vsyncpa [#allocation4 + $0x1], 0 }
   0x5   :  { %11 = vsyncpa [#allocation6], 0 }
   0x6   :  { %13 = vsyncpa [#allocation6 + $0x1], 0  ;;  %s1045_s12 = smov 0   ;;  %s1047_s13 = smov 0  }
   0x7   :  { %s1049_s14 = smov 0   ;;  %s1051_s15 = smov 0  }
   0x8   :  { %s1053_s16 = smov 0   ;;  %s1055_s17 = smov 0  }
   0x9   :  { %s1057_s18 = smov 0   ;;  %s1059_s19 = smov 0  }
   0xa   :  { %s1061_s20 = smov 0  }
   0xb LB: > { %1358 = sst [smem:[#allocation11_spill]] %s1008_s18  ;;  %s1349_s21 = sadd.s32 4294967295, %s1016_s20   ;;  %s1016_s20 = sphi %s1061_s20, %s19_s20   ;;  %s1012_s19 = sphi %s1059_s19, %s1385_s19   ;;  %s1008_s18 = sphi %s1057_s18, %s1384_s18   ;;  %s1004_s17 = sphi %s1055_s17, %s1383_s17   ;;  %s1000_s16 = sphi %s1053_s16, %s1382_s16   ;;  %s996_s15 = sphi %s1051_s15, %s1381_s15   ;;  %s992_s14 = sphi %s1049_s14, %s1380_s14   ;;  %s988_s13 = sphi %s1047_s13, %s1379_s13   ;;  %s984_s12 = sphi %s1045_s12, %s1378_s12  }
   0xc   : > { %p51_p0 = scmp.ne.s32.totalorder %s1000_s16, %s996_s15  ;;  %p1090_p1 = scmp.eq.s32.totalorder %s1349_s21, 0 }
   0xd   : > { %p103_p2 = scmp.ne.s32.totalorder %s988_s13, %s984_s12  ;;  %p656_p3 = scmp.ge.s32.totalorder %s1016_s20, 1 }
   0xe   : > { %s1359_s22 = scalar_select %p1090_p1, 1, 0 }
   0xf   : > { %p166_p4 = scmp.lt.s32.totalorder %s1016_s20, 3  ;;  %p1099_p5 = por %p1090_p1, %p51_p0 }
  0x10   : > { %p1105_p6 = por %p103_p2, %p1090_p1  ;;  %s1018_s26 = smov [#allocation7]  }
  0x11   : > { %s1360_s23 = scalar_select %p1099_p5, 1, 0 }
  0x12   : > { %s1361_s24 = scalar_select %p1105_p6, 1, 0 }
  0x13   : > { %p1109_p7 = pnand %p656_p3, %p166_p4  ;;  %s181_s27 = sshll.u32 %s1018_s26, 4  ;;  %s182_s27 = int_to_ptr.vmem [resolvable:$true] %s181_s27 }
  0x14   : > { %s1364_s2 = sld [smem:[#allocation12_spill]] }
  0x15   : > { %s1362_s25 = scalar_select %p1109_p7, 1, 0 }
  0x16   : > { %p738_p8 = pneg %p1109_p7 }
  0x18   : > { %p1117_p9 = pnand %p738_p8, %p1090_p1 }
  0x1a   : > { %s846_s4 = scalar_lea.hbm %s1364_s2, 1024  ;;  %p848_p11 = pneg %p1117_p9 }
  0x1b   : > { %p847_p10 = scmp.ne.s32.totalorder %s1364_s2, %s846_s4  ;;  %p853_p0 = scmp.lt.u32.totalorder %s846_s4, %s1364_s2 }
  0x1d   : > { %p849_p12 = pnand %p848_p11, %p847_p10 }
  0x1f   : > { %p850_p13 = pneg %p849_p12 }
  0x21   : > { %p855_p2 = pnand %p853_p0, %p850_p13 }
  0x23   : > { %858 = shalt.err (!%p855_p2)
}
  0x24   : > { %s859_s9 = scalar_lea.vmem %s182_s27, 1024  ;;  %p867_p1 = scmp.lt.s32.totalorder %s182_s27, %s182_s27 }
  0x25   : > { %p860_p3 = scmp.ne.s32.totalorder %s182_s27, %s859_s9  ;;  %p868_p6 = scmp.lt.s32.totalorder %s859_s9, %s859_s9 }
  0x27   : > { %p862_p4 = pnand %p860_p3, %p848_p11  ;;  %p869_p5 = por %p868_p6, %p867_p1 }
  0x29   : > { %p863_p8 = pneg %p862_p4 }
  0x2b   : > { %p870_p7 = pnand %p869_p5, %p863_p8 }
  0x2d   : > { %873 = shalt.err (!%p870_p7)
}
  0x2e   : > { %s1350_s10 = smov 64   ;;  %s1352_s11 = smov 4  }
  0x2f   : > { %741 = dma.hbm_to_vmem [thread:$0]  (!%p1117_p9), %s1364_s2, 1024, %s182_s27, [#allocation6], %s1350_s10, %s1350_s10, %s1352_s11  }
  0x30   : > { %s31_s26 = sadd.s32 1, %s1012_s19  ;;  %s38_s29 = sadd.s32 1, %s1004_s17 }
  0x31   : > { %p33_p1 = scmp.ge.s32.totalorder %s31_s26, 2  ;;  %p45_p5 = scmp.ne.s32.totalorder %s1004_s17, %s1000_s16 }
  0x32   : > { %p46_p6 = scmp.eq.s32.totalorder %s1016_s20, 0  ;;  %s63_s5 = ssub.s32 0, %s31_s26 }
  0x33   : > { %s1145_s30 = scalar_select %p33_p1, 0, %s31_s26  }
  0x34   : > { %p1149_p7 = por %p46_p6, %p45_p5  ;;  %s650_s27 = smin.u32 %s63_s5, %s31_s26 }
  0x35   : > { %s35_s4 = ssub.s32 %s1012_s19, %s1145_s30  ;;  %s1155_s6 = sand.u32 1, %s650_s27  }
  0x36   : > { %p36_p9 = scmp.eq.s32.totalorder %s35_s4, 0  ;;  %s74_s7 = sadd.s32 1, %s1145_s30 }
  0x37   : > { %s76_s9 = ssub.s32 0, %s74_s7  ;;  %p1355_p10 = scmp.lt.s32.totalorder %s1016_s20, 2 }
  0x38   : > { %s1159_s8 = scalar_select %p36_p9, %s1004_s17, %s38_s29  }
  0x39   : > { %s653_s12 = smin.u32 %s76_s9, %s74_s7  ;;  %s195_s21 = sand.u32 1, %s1004_s17  }
  0x3a   : > { %s1162_s15 = sand.u32 1, %s653_s12   ;;  %s659_s10 = sshll.u32 %s195_s21, 3 }
  0x3b   : > { %s691_s11 = sshll.u32 %s1012_s19, 7  ;;  %s199_s26 = scalar_lea.vmem [#allocation3], %s659_s10 }
  0x3c   : > { %s1169_s18 = scalar_lea.hbm %s1340_s0, %s691_s11  ;;  %s206_s29 = sshll.u32 %s199_s26, 4  ;;  %s1179_s29 = int_to_ptr.vmem [resolvable:$true] %s206_s29 }
  0x3d   : > { %p1175_p11 = pnand %p1355_p10, %p1149_p7  ;;  %s1181_s5 = scalar_lea.sflag [#allocation4], %s195_s21 }
  0x3e   : > { %s874_s2 = scalar_lea.hbm %s1169_s18, 128  ;;  %s879_s11 = scalar_lea.hbm %s1340_s0, 1024 }
  0x3f   : > { %p875_p12 = scmp.ne.s32.totalorder %s1169_s18, %s874_s2  ;;  %p876_p13 = pneg %p1175_p11 }
  0x40   : > { %p880_p3 = scmp.lt.u32.totalorder %s1169_s18, %s1340_s0  ;;  %p881_p4 = scmp.lt.u32.totalorder %s879_s11, %s874_s2 }
  0x41   : > { %p877_p0 = pnand %p876_p13, %p875_p12  ;;  %p883_p1 = scmp.lt.u32.totalorder %s874_s2, %s1169_s18 }
  0x42   : > { %p882_p8 = por %p881_p4, %p880_p3 }
  0x43   : > { %p878_p2 = pneg %p877_p0 }
  0x44   : > { %p884_p5 = por %p883_p1, %p882_p8 }
  0x46   : > { %p885_p7 = pnand %p884_p5, %p878_p2 }
  0x48   : > { %888 = shalt.err (!%p885_p7)
}
  0x49   : > { %s889_s21 = scalar_lea.vmem %s1179_s29, 128  ;;  %s1021_s7 = smov [#allocation3]  }
  0x4a   : > { %p890_p9 = scmp.ne.s32.totalorder %s1179_s29, %s889_s21  ;;  %s894_s9 = sshll.u32 %s1021_s7, 4  ;;  %s895_s9 = int_to_ptr.vmem [resolvable:$false] %s894_s9 }
  0x4b   : > { %s896_s12 = scalar_lea.vmem %s895_s9, 256  ;;  %p897_p10 = scmp.lt.s32.totalorder %s1179_s29, %s895_s9 }
  0x4c   : > { %p892_p12 = pnand %p890_p9, %p876_p13  ;;  %p898_p3 = scmp.lt.s32.totalorder %s896_s12, %s889_s21 }
  0x4e   : > { %p893_p0 = pneg %p892_p12  ;;  %p899_p4 = por %p898_p3, %p897_p10 }
  0x50   : > { %p900_p8 = pnand %p899_p4, %p893_p0 }
  0x52   : > { %903 = shalt.err (!%p900_p8)
}
  0x53   : > { %s1367_s26 = smov 4   ;;  %s1368_s2 = smov 64  }
  0x54   : > { %745 = dma.hbm_to_vmem [thread:$0]  (!%p1175_p11), %s1169_s18, 128, %s1179_s29, %s1181_s5, %s1368_s2, %s1368_s2, %s1367_s26  }
  0x55   : > { %p655_p10 = scmp.lt.s32.totalorder %s1162_s15, 0  ;;  %s85_s4 = sadd.s32 2, %s1162_s15 }
  0x56   : > { %s90_s3 = sadd.s32 1, %s992_s14  ;;  %p652_p13 = scmp.lt.s32.totalorder %s1155_s6, 0 }
  0x57   : > { %s72_s10 = sadd.s32 2, %s1155_s6  ;;  %s1387_s4 = smov (!%p655_p10, %s85_s4), %s1162_s15 }
  0x58   : > { %s1389_s10 = smov (!%p652_p13, %s72_s10), %s1155_s6  ;;  %p97_p2 = scmp.ne.s32.totalorder %s992_s14, %s988_s13 }
  0x59   : > { %s216_s11 = sand.u32 1, %s1016_s20   ;;  %s87_s28 = ssub.s32 %s1389_s10, %s1387_s4 }
  0x5a   : > { %p88_p1 = scmp.eq.s32.totalorder %s87_s28, 0  ;;  %p99_p5 = por %p97_p2, %p46_p6 }
  0x5b   : > { %s218_s27 = sand.u32 1, %s992_s14   ;;  %s692_s21 = sshll.u32 %s1389_s10, 7 }
  0x5c   : > { %s1226_s7 = scalar_select %p88_p1, %s992_s14, %s90_s3  }
  0x5d   : > { %s662_s9 = sshll.u32 %s218_s27, 3  ;;  %s1231_s5 = scalar_lea.hbm %s1341_s1, %s692_s21 }
  0x5e   : > { %p1369_p11 = scmp.lt.s32.totalorder %s1016_s20, 2  ;;  %s220_s15 = scalar_lea.vmem [#allocation5], %s662_s9 }
  0x5f   : > { %s240_s12 = sshll.u32 %s220_s15, 4  ;;  %s1241_s4 = scalar_lea.sflag [#allocation6], %s216_s11  ;;  %s1239_s12 = int_to_ptr.vmem [resolvable:$true] %s240_s12 }
  0x60   : > { %p1235_p7 = pnand %p1369_p11, %p99_p5  ;;  %s904_s3 = scalar_lea.hbm %s1231_s5, 128 }
  0x61   : > { %p905_p6 = scmp.ne.s32.totalorder %s1231_s5, %s904_s3  ;;  %s909_s27 = scalar_lea.hbm %s1341_s1, 1024 }
  0x62   : > { %p906_p9 = pneg %p1235_p7  ;;  %p910_p3 = scmp.lt.u32.totalorder %s1231_s5, %s1341_s1 }
  0x63   : > { %p911_p4 = scmp.lt.u32.totalorder %s909_s27, %s904_s3  ;;  %p913_p10 = scmp.lt.u32.totalorder %s904_s3, %s1231_s5 }
  0x64   : > { %p907_p12 = pnand %p906_p9, %p905_p6 }
  0x65   : > { %p912_p8 = por %p911_p4, %p910_p3 }
  0x66   : > { %p908_p0 = pneg %p907_p12 }
  0x67   : > { %p914_p13 = por %p913_p10, %p912_p8 }
  0x69   : > { %p915_p2 = pnand %p914_p13, %p908_p0 }
  0x6b   : > { %918 = shalt.err (!%p915_p2)
}
  0x6c   : > { %s919_s11 = scalar_lea.vmem %s1239_s12, 128  ;;  %s1022_s9 = smov [#allocation5]  }
  0x6d   : > { %p920_p1 = scmp.ne.s32.totalorder %s1239_s12, %s919_s11  ;;  %s924_s29 = sshll.u32 %s1022_s9, 4  ;;  %s925_s29 = int_to_ptr.vmem [resolvable:$false] %s924_s29 }
  0x6e   : > { %s926_s15 = scalar_lea.vmem %s925_s29, 256  ;;  %p927_p6 = scmp.lt.s32.totalorder %s1239_s12, %s925_s29 }
  0x6f   : > { %p922_p5 = pnand %p920_p1, %p906_p9  ;;  %p928_p12 = scmp.lt.s32.totalorder %s926_s15, %s919_s11 }
  0x71   : > { %p923_p11 = pneg %p922_p5  ;;  %p929_p3 = por %p928_p12, %p927_p6 }
  0x73   : > { %p930_p4 = pnand %p929_p3, %p923_p11 }
  0x75   : > { %933 = shalt.err (!%p930_p4)
}
  0x76   : > { %748 = dma.hbm_to_vmem [thread:$0]  (!%p1235_p7), %s1231_s5, 128, %s1239_s12, %s1241_s4, %s1368_s2, %s1368_s2, %s1367_s26  }
  0x77   : > { %p1371_p9 = scmp.ne.s32.totalorder %s1362_s25, 0 }
  0x78   : > { %s254_s3 = sand.u32 (!%p1371_p9), 1, %s1000_s16   ;;  %p1372_p0 = scmp.ne.s32.totalorder (!%p1371_p9), %s1360_s23, 0 }
  0x79   : > { %252 = sbr.rel (%p1371_p9) target bundleno = 605 (0x25d), region = 32  ;;  %s1275_s10 = sshll.u32 (!%p1371_p9), %s254_s3, 3 }
  0x7a   : > { %s255_s28 = scalar_lea.sflag (!%p1371_p9), [#allocation4], %s254_s3  ;;  %s258_s27 = scalar_lea.vmem (!%p1371_p9), [#allocation3], %s1275_s10 }
  0x80   : > { %971 = dma.done.wait (%p1372_p0), %s255_s28, 128  }
  0x81   : > { %973 = vsyncadd (%p1372_p0), %s255_s28, 4294967168  ;;  %s1373_s6 = sadd.s32 4294967295, %s1016_s20   ;;  %s265_s25 = sand.u32 1, %s988_s13  }
  0x82   : > { %s263_s26 = sand.u32 1, %s1373_s6   ;;  %s1285_s2 = sshll.u32 %s265_s25, 3 }
  0x83   : > { %s264_s5 = scalar_lea.sflag [#allocation6], %s263_s26  ;;  %s267_s12 = scalar_lea.vmem [#allocation5], %s1285_s2 }
  0x84   : > { %p1374_p7 = scmp.ne.s32.totalorder %s1361_s24, 0 }
  0x86   : > { %975 = dma.done.wait (%p1374_p7), %s264_s5, 128  }
  0x87   : > { %977 = vsyncadd (%p1374_p7), %s264_s5, 4294967168  ;;  %p1375_p8 = scmp.ne.s32.totalorder %s1359_s22, 0 }
  0x89   : > { %979 = dma.done.wait (%p1375_p8), [#allocation6], 1024  }
  0x8a   : > { %981 = vsyncadd (%p1375_p8), [#allocation6], 4294966272  ;;  %v1023_v0 = vmov 0.0   ;;  %vm1024_vm0 = vmmov 0   ;;  %v829_v1 = vld [vmem:[#allocation7] sm:$0xff]   ;;  %v830_v2 = vld [vmem:[#allocation7 + $0x8] sm:$0xff]   ;;  %v462_v19 = vlaneseq }
  0x8b   : > { %710 = vmatprep.subr.bf16.mxu0 %v1023_v0  ;;  %726 = vmatprep.mubr.msk.bf16.mxu0 %vm1024_vm0, %v1023_v0  ;;  %v831_v3 = vld [vmem:[#allocation7 + $0x10] sm:$0xff]   ;;  %v832_v4 = vld [vmem:[#allocation7 + $0x18] sm:$0xff]   ;;  %v833_v5 = vld [vmem:[#allocation7 + $0x20] sm:$0xff]   ;;  %vm326_vm1 = vcmask 7168   ;;  %s1376_s22 = sld [smem:[#allocation11_spill]]  ;;  %s1377_s11 = sld [smem:[#allocation13_spill]] }
  0x8c   : > { %711 = vmatpush3.bf16.xpose.msra.mxu0 %v829_v1  ;;  %v834_v6 = vld [vmem:[#allocation7 + $0x28] sm:$0xff]   ;;  %v835_v7 = vld [vmem:[#allocation7 + $0x30] sm:$0xff]   ;;  %v836_v8 = vld [vmem:[#allocation7 + $0x38] sm:$0xff]   ;;  %327 = vst.msk [vmem:[#allocation2] sm:$0xff] %vm326_vm1, %v1023_v0  ;;  %v463_v26 = vshrl.u32 %v462_v19, 7  ;;  %v469_v32 = vand.u32 127, %v462_v19 }
  0x8d   : > { %712 = vmatprep.subr.bf16.mxu0 %v1023_v0  ;;  %v837_v9 = vld [vmem:[%s258_s27] sm:$0xff]   ;;  %v698_v11 = vld [vmem:[%s267_s12] sm:$0xff]   ;;  %328 = vst.msk [vmem:[#allocation2 + $0x8] sm:$0xff] %vm326_vm1, %v1023_v0 }
  0x8e   : > { %v694_v10 = vld [vmem:[%s258_s27] sm:$0xff]   ;;  %v699_v13 = vunpack.c.l.bf16 %v698_v11  ;;  %v700_v15 = vunpack.c.h.bf16 %v698_v11  ;;  %v464_v33 = vadd.s32 8, %v463_v26  ;;  %vm474_vm3 = vcmp.ge.s32.totalorder %v469_v32, 32 }
  0x8f   : > { %v695_v12 = vunpack.c.l.bf16 %v694_v10  ;;  %v696_v14 = vunpack.c.h.bf16 %v694_v10 }
  0x91   : > { %v517_v16 = vmul.f32 %v699_v13, %v695_v12  ;;  %v518_v17 = vmul.f32 %v700_v15, %v696_v14  ;;  %s685_s23 = sshll.u32 %s1376_s22, 4  ;;  %s672_s24 = sshll.u32 %s1376_s22, 1 }
  0x92   : > { %v465_v29 = vstv %s685_s23  ;;  %p316_p10 = scmp.lt.s32.totalorder %s672_s24, 3 }
  0x93   : > { %519 = vadd.xlane.f32.xlu1 %v517_v16  ;;  %v466_v31 = vadd.s32 %v465_v29, %v463_v26  ;;  %v467_v34 = vadd.s32 %v465_v29, %v464_v33  ;;  %v479_v39 = vld [vmem:[#allocation2] sm:$0xff] }
  0x94   : > { %713 = vmatpush3.bf16.xpose.msra.mxu0 %v830_v2  ;;  %v480_v42 = vld [vmem:[#allocation2 + $0x8] sm:$0xff]  ;;  %s1391_s24 = smov (!%p316_p10, %s672_s24), 3 }
  0x95   : > { %714 = vmatprep.subr.bf16.mxu0 %v1023_v0  ;;  %vm472_vm2 = vcmp.eq.s32.totalorder %v466_v31, %v469_v32  ;;  %vm473_vm5 = vcmp.eq.s32.totalorder %v467_v34, %v469_v32  ;;  %s673_s4 = sshll.u32 %s1391_s24, 3 }
  0x96   : > { %vm477_vm4 = vmor %vm472_vm2, %vm474_vm3  ;;  %s319_s9 = scalar_lea.vmem %s1377_s11, %s673_s4 }
  0x97   : > { %521 = vadd.xlane.f32.xlu1 %v518_v17  ;;  %vm478_vm6 = vmor %vm473_vm5, %vm474_vm3 }
  0x9c   : > { %715 = vmatpush3.bf16.xpose.msra.mxu0 %v831_v3 }
  0x9d   : > { %716 = vmatprep.subr.bf16.mxu0 %v1023_v0 }
  0xa4   : > { %717 = vmatpush3.bf16.xpose.msra.mxu0 %v832_v4 }
  0xa5   : > { %718 = vmatprep.subr.bf16.mxu0 %v1023_v0 }
  0xac   : > { %719 = vmatpush3.bf16.xpose.msra.mxu0 %v833_v5 }
  0xad   : > { %720 = vmatprep.subr.bf16.mxu0 %v1023_v0 }
  0xb4   : > { %721 = vmatpush3.bf16.xpose.msra.mxu0 %v834_v6 }
  0xb5   : > { %722 = vmatprep.subr.bf16.mxu0 %v1023_v0 }
  0xbc   : > { %723 = vmatpush3.bf16.xpose.msra.mxu0 %v835_v7 }
  0xbd   : > { %724 = vmatprep.subr.bf16.mxu0 %v1023_v0 }
  0xc4   : > { %725 = vmatpush3.bf16.xpose.msra.mxu0 %v836_v8 }
  0xcb   : > { %727 = vmatmul.mubr.bf16.vlgmr.msra.gmra.mrb[0].mxu0 %v837_v9 }
 0x120   : > { %v520_v46 = vpop.xlane.xlu1 %519 }
 0x121   : > { %v687_v48 = vadd.f32 -1.0, %v520_v46 }
 0x123   : > { %v525_v50 = vmul.f32 14.285714, %v687_v48 }
 0x124   : > { %v522_v49 = vpop.xlane.xlu1 %521 }
 0x125   : > { %v688_v51 = vadd.f32 -1.0, %v522_v49 }
 0x127   : > { %v526_v55 = vmul.f32 14.285714, %v688_v51 }
 0x19e   : > { %v435_v18 = vpop.f32.mrb[0].mxu0 }
 0x19f   : > { %v683_v20 = vadd.f32 -1.0, %v435_v18  ;;  %v728_v21 = vpop.f32.mrb[1].mxu0 }
 0x1a0   : > { %v438_v22 = vpop.f32.mrb[2].mxu0 }
 0x1a1   : > { %v444_v23 = vmul.f32 14.285714, %v683_v20  ;;  %v684_v24 = vadd.f32 -1.0, %v438_v22  ;;  %v729_v25 = vpop.f32.mrb[3].mxu0 }
 0x1a3   : > { %v446_v27 = vmul.f32 1.442695, %v444_v23  ;;  %v445_v28 = vmul.f32 14.285714, %v684_v24 }
 0x1a5   : > { %838 = vpow2.f32 %v446_v27  ;;  %v448_v30 = vmul.f32 1.442695, %v445_v28 }
 0x1a7   : > { %840 = vpow2.f32 %v448_v30 }
 0x1af   : > { %v839_v35 = vpop.eup %838 }
 0x1b0   : > { %v481_v36 = vsel %vm477_vm4, 0.0, %v839_v35 }
 0x1b1   : > { %v841_v37 = vpop.eup %840  ;;  %483 = vadd.xlane.f32.xlu0 %v481_v36 }
 0x1b2   : > { %v482_v38 = vsel %vm478_vm6, 0.0, %v841_v37 }
 0x1b5   : > { %485 = vadd.xlane.f32.xlu0 %v482_v38 }
 0x23e   : > { %v484_v40 = vpop.xlane.xlu0 %483 }
 0x23f   : > { %v487_v41 = vadd.f32 %v484_v40, %v479_v39 }
 0x241   : > { %490 = vst.msk [vmem:[#allocation2] sm:$0xff] %vm326_vm1, %v487_v41 }
 0x242   : > { %v486_v43 = vpop.xlane.xlu0 %485 }
 0x243   : > { %v488_v44 = vadd.f32 %v486_v43, %v480_v42 }
 0x245   : > { %491 = vst.msk [vmem:[#allocation2 + $0x8] sm:$0xff] %vm326_vm1, %v488_v44 }
 0x248   : > { %v527_v45 = vld [vmem:[#allocation2] sm:$0xff] }
 0x249   : > { %842 = vlog2.f32 %v527_v45 }
 0x24c   : > { %v528_v47 = vld [vmem:[#allocation2 + $0x8] sm:$0xff] }
 0x24d   : > { %844 = vlog2.f32 %v528_v47 }
 0x253   : > { %v843_v52 = vpop.eup %842 }
 0x254   : > { %v530_v53 = vmul.f32 0.6931472, %v843_v52 }
 0x256   : > { %v533_v54 = vsub.f32 %v525_v50, %v530_v53 }
 0x257   : > { %v845_v56 = vpop.eup %844 }
 0x258   : > { %536 = vst.msk [vmem:[%s319_s9] sm:$0xff] %vm326_vm1, %v533_v54  ;;  %v532_v57 = vmul.f32 0.6931472, %v845_v56 }
 0x25a   : > { %v534_v58 = vsub.f32 %v526_v55, %v532_v57 }
 0x25c   : > { %537 = vst.msk [vmem:[%s319_s9 + $0x8] sm:$0xff] %vm326_vm1, %v534_v58 }
 0x25d PF: > { %s19_s20 = sadd.s32 1, %s1016_s20   ;;  %s1378_s12 = smov %s988_s13 }
 0x25e   : > { %p16_p13 = scmp.ge.s32.totalorder %s19_s20, 4   ;;  %s1379_s13 = smov %s992_s14 }
 0x25f   : > { %s1380_s14 = smov %s1226_s7  ;;  %s1381_s15 = smov %s1000_s16 }
 0x260   : > { %s1382_s16 = smov %s1004_s17  ;;  %s1383_s17 = smov %s1159_s8 }
 0x261   : > { %s1384_s18 = smov %s1012_s19  ;;  %s1385_s19 = smov %s1145_s30 }
 0x262   :  { %18 = sbr.rel (!%p16_p13) target bundleno = 11 (0xb), region = 106 }
 0x269   :  { %560 = vsyncpa [#allocation4], 1 }
 0x26a   :  { %562 = vsyncpa [#allocation4 + $0x1], 1 }
 0x26b   :  { %563 = vsyncpa [#allocation6], 1 }
 0x26c   :  { %565 = vsyncpa [#allocation6 + $0x1], 1 }

</bundles_post_ra>
